<compile_context>
chip_gen: v7x
topology: tpu7x:2x2x1
jax: 0.10.0
libtpu: 0.0.40
codegen_flags: <defaults>
</compile_context>

<pallas_src>
import functools

import numpy as np
import jax
import jax.numpy as jnp
from jax.experimental import pallas as pl
from jax.experimental.pallas import tpu as pltpu


def _round_up(x, m):
    return ((x + m - 1) // m) * m


def _custom_loss_kernel(x_ref, out_ref, *, d):
    """Per-tile body.

    x_ref   : (4*d, Bt) f32 — rows: qa_lo[0..d), qa_hi[0..d), qb_lo[0..d), qb_hi[0..d)
    out_ref : (1, Bt)   f32 — per-pair loss (lane-dense row).
    """
    qa_part = qb_part = cross_part = located = sq = overlap = None

    # Unrolled over the (small, static) number of box dimensions: every op below
    # is a full-lane VPU op on (1, Bt) rows; no cross-lane reductions.
    for i in range(d):
        qa_lo = x_ref[i:i + 1, :]
        qa_hi = x_ref[d + i:d + i + 1, :]
        qb_lo = x_ref[2 * d + i:2 * d + i + 1, :]
        qb_hi = x_ref[3 * d + i:3 * d + i + 1, :]

        ext_a = qa_hi - qa_lo
        ext_b = qb_hi - qb_lo
        ext_c = jnp.minimum(qa_hi, qb_hi) - jnp.maximum(qa_lo, qb_lo)

        # How many of {qb_lo_i, qb_hi_i} lie inside [qa_lo_i, qa_hi_i].
        in_lo = jnp.logical_and(qb_lo >= qa_lo, qb_lo <= qa_hi).astype(jnp.float32)
        in_hi = jnp.logical_and(qb_hi >= qa_lo, qb_hi <= qa_hi).astype(jnp.float32)
        cnt = in_lo + in_hi

        # Strict-overlap test per dim (matches the `<=` early exit in torch).
        ov = jnp.logical_and(qa_hi > qb_lo, qb_hi > qa_lo)

        # Contribution of this dim to sum((qa - qb)^2).
        sqd = (qa_lo - qb_lo) ** 2 + (qa_hi - qb_hi) ** 2

        if i == 0:
            qa_part, qb_part, cross_part = ext_a, ext_b, ext_c
            located, overlap, sq = cnt, ov, sqd
        else:
            qa_part = qa_part * ext_a
            qb_part = qb_part * ext_b
            cross_part = cross_part * ext_c
            located = located * cnt
            overlap = jnp.logical_and(overlap, ov)
            sq = sq + sqd

    skew = 3.0 + 0.5 * located
    # Use the real denominators only on lanes that take the overlap branch;
    # disjoint (or zero-padded) lanes divide by 1.0 so the dead branch never
    # produces inf/nan.  Forward value is unchanged vs. the PyTorch module.
    safe_qa = jnp.where(overlap, qa_part, 1.0)
    safe_qb = jnp.where(overlap, qb_part, 1.0)
    loss_overlap = (skew * (qa_part - cross_part) / safe_qa
                    + (qb_part - cross_part) / safe_qb)
    loss_disjoint = 2.0 + sq * (1.0 / float(d))

    out_ref[...] = jnp.where(overlap, loss_overlap, loss_disjoint)

    # TODO(synk): the running counter `self.total_located_in_nums` is a Python
    # side-effect on the module; not reproduced here (loss values unaffected).


def custom_loss_batched(qb, qa, *, block_b=512):
    """Batched loss.

    qa, qb: (B, 2*d) float32, each row laid out as [lows..., highs...].
    Returns: (B,) float32 per-pair losses.
    """
    qa = jnp.asarray(qa, jnp.float32)
    qb = jnp.asarray(qb, jnp.float32)
    assert qa.shape == qb.shape and qa.ndim == 2 and qa.shape[1] % 2 == 0
    B, two_d = qa.shape
    d = two_d // 2

    # Lane-dense batch tile: multiple of 128, capped at block_b; pad batch to it.
    bt = min(block_b, _round_up(B, 128))
    Bp = _round_up(B, bt)

    # Single stacked input (one DMA stream): (4*d, Bp), batch on lanes,
    # rows = [qa_lo(d), qa_hi(d), qb_lo(d), qb_hi(d)].
    x = jnp.concatenate([qa, qb], axis=1).T        # (4*d, B)
    if Bp != B:
        x = jnp.pad(x, ((0, 0), (0, Bp - B)))      # padded lanes fall into the
                                                   # disjoint branch -> finite.

    out = pl.pallas_call(
        functools.partial(_custom_loss_kernel, d=d),
        out_shape=jax.ShapeDtypeStruct((1, Bp), jnp.float32),
        grid=(Bp // bt,),
        in_specs=[pl.BlockSpec((4 * d, bt), lambda i: (0, i))],
        out_specs=pl.BlockSpec((1, bt), lambda i: (0, i)),
        compiler_params=pltpu.CompilerParams(
            dimension_semantics=("parallel",)),
    )(x)
    return out[0, :B]


def custom_loss(qb, qa):
    """Single-pair API matching the original nn.Module forward signature.

    qa, qb: 1-D float32 arrays of length 2*d, layout [lows..., highs...].
    """
    qa = jnp.asarray(qa, jnp.float32).reshape(1, -1)
    qb = jnp.asarray(qb, jnp.float32).reshape(1, -1)
    return custom_loss_batched(qb, qa)[0]


def _reference_loss(qb, qa):
    """Faithful Python port of the PyTorch forward (for verification)."""
    qa = np.asarray(qa, np.float64)
    qb = np.asarray(qb, np.float64)
    d = len(qa) // 2
    qa_part, qb_part, cross_part = 1.0, 1.0, 1.0
    cross_boundary = []
    flag = True
    for i in range(d):
        qa_part *= qa[i + d] - qa[i]
        qb_part *= qb[i + d] - qb[i]
    for i in range(d):
        if qa[i + d] <= qb[i] or qb[i + d] <= qa[i]:
            flag = False
            break
        cross_boundary.append([max(qa[i], qb[i]), min(qa[i + d], qb[i + d])])
    if flag:
        points = [[]]
        for i in range(d):
            tmp = points.copy()
            points = []
            for pt in tmp:
                points.append(pt + [qb[i]])
                points.append(pt + [qb[i + d]])
            cross_part *= cross_boundary[i][1] - cross_boundary[i][0]
        located = 0
        for pt in points:
            ok = True
            for i in range(d):
                if pt[i] > qa[i + d] or pt[i] < qa[i]:
                    ok = False
                    break
            if ok:
                located += 1
        skew = 3 + located * 0.5
        return skew * (qa_part - cross_part) / qa_part + (qb_part - cross_part) / qb_part
    else:
        return 2.0 + float(np.sum((qa - qb) ** 2)) / d


if __name__ == "__main__":
    key = jax.random.PRNGKey(0)
    B, d = 256, 4                       # dim_nums=4 -> each qa/qb row has length 8
    k1, k2, k3, k4 = jax.random.split(key, 4)

    # Deterministic boxes: even batch indices overlap, odd ones are shifted far
    # away (disjoint branch), giving coverage of both code paths.
    qa_lo = jax.random.uniform(k1, (B, d), jnp.float32)
    qa_hi = qa_lo + 0.25 + jax.random.uniform(k2, (B, d), jnp.float32)
    shift = jnp.where((jnp.arange(B) % 2 == 0)[:, None], 0.0, 10.0).astype(jnp.float32)
    qb_lo = qa_lo + 0.1 * jax.random.uniform(k3, (B, d), jnp.float32) + shift
    qb_hi = qb_lo + 0.2 + jax.random.uniform(k4, (B, d), jnp.float32)

    qa = jnp.concatenate([qa_lo, qa_hi], axis=1)   # (B, 2d) [lows..., highs...]
    qb = jnp.concatenate([qb_lo, qb_hi], axis=1)

    losses = custom_loss_batched(qb, qa)
    jax.block_until_ready(losses)

    qa_np, qb_np = np.asarray(qa), np.asarray(qb)
    ref = np.array([_reference_loss(qb_np[i], qa_np[i]) for i in range(B)])
    np.testing.assert_allclose(np.asarray(losses), ref, rtol=1e-4, atol=1e-4)

    # Single-pair path (matches the original module's call signature).
    single = custom_loss(qb[0], qa[0])
    jax.block_until_ready(single)
    assert abs(float(single) - ref[0]) < 1e-4, (float(single), ref[0])

    print("KERNEL_OK")
</pallas_src>

<mosaic_0001>
module attributes {stable_mosaic.version = 11 : i64} {
  func.func @_custom_loss_kernel(%arg0: i32, %arg1: memref<16x256xf32, #tpu.memory_space<vmem>>, %arg2: memref<1x256xf32, #tpu.memory_space<vmem>>) attributes {dimension_semantics = [#tpu.dimension_semantics<parallel>], iteration_bounds = array<i64: 1>, scalar_prefetch = 0 : i64, scratch_operands = 0 : i64, tpu.core_type = #tpu.core_type<tc>, window_params = [{transform_indices = @transform_0, window_bounds = array<i64: 16, 256>}, {transform_indices = @transform_1, window_bounds = array<i64: 1, 256>}]} {
    %c0 = arith.constant 0 : index
    %c0_0 = arith.constant 0 : index
    %0 = vector.load %arg1[%c0, %c0_0] : memref<16x256xf32, #tpu.memory_space<vmem>>, vector<1x256xf32>
    %c4 = arith.constant 4 : index
    %c0_1 = arith.constant 0 : index
    %1 = vector.load %arg1[%c4, %c0_1] : memref<16x256xf32, #tpu.memory_space<vmem>>, vector<1x256xf32>
    %c8 = arith.constant 8 : index
    %c0_2 = arith.constant 0 : index
    %2 = vector.load %arg1[%c8, %c0_2] : memref<16x256xf32, #tpu.memory_space<vmem>>, vector<1x256xf32>
    %c12 = arith.constant 12 : index
    %c0_3 = arith.constant 0 : index
    %3 = vector.load %arg1[%c12, %c0_3] : memref<16x256xf32, #tpu.memory_space<vmem>>, vector<1x256xf32>
    %4 = arith.subf %1, %0 : vector<1x256xf32>
    %5 = arith.subf %3, %2 : vector<1x256xf32>
    %6 = arith.minimumf %1, %3 : vector<1x256xf32>
    %7 = arith.maximumf %0, %2 : vector<1x256xf32>
    %8 = arith.subf %6, %7 : vector<1x256xf32>
    %9 = arith.cmpf oge, %2, %0 : vector<1x256xf32>
    %10 = arith.cmpf ole, %2, %1 : vector<1x256xf32>
    %11 = arith.andi %9, %10 : vector<1x256xi1>
    %12 = arith.extui %11 : vector<1x256xi1> to vector<1x256xi32>
    %13 = arith.sitofp %12 : vector<1x256xi32> to vector<1x256xf32>
    %14 = arith.cmpf oge, %3, %0 : vector<1x256xf32>
    %15 = arith.cmpf ole, %3, %1 : vector<1x256xf32>
    %16 = arith.andi %14, %15 : vector<1x256xi1>
    %17 = arith.extui %16 : vector<1x256xi1> to vector<1x256xi32>
    %18 = arith.sitofp %17 : vector<1x256xi32> to vector<1x256xf32>
    %19 = arith.addf %13, %18 : vector<1x256xf32>
    %20 = arith.cmpf ogt, %1, %2 : vector<1x256xf32>
    %21 = arith.cmpf ogt, %3, %0 : vector<1x256xf32>
    %22 = arith.andi %20, %21 : vector<1x256xi1>
    %23 = arith.subf %0, %2 : vector<1x256xf32>
    %24 = arith.mulf %23, %23 : vector<1x256xf32>
    %25 = arith.subf %1, %3 : vector<1x256xf32>
    %26 = arith.mulf %25, %25 : vector<1x256xf32>
    %27 = arith.addf %24, %26 : vector<1x256xf32>
    %c1 = arith.constant 1 : index
    %c0_4 = arith.constant 0 : index
    %28 = vector.load %arg1[%c1, %c0_4] : memref<16x256xf32, #tpu.memory_space<vmem>>, vector<1x256xf32>
    %c5 = arith.constant 5 : index
    %c0_5 = arith.constant 0 : index
    %29 = vector.load %arg1[%c5, %c0_5] : memref<16x256xf32, #tpu.memory_space<vmem>>, vector<1x256xf32>
    %c9 = arith.constant 9 : index
    %c0_6 = arith.constant 0 : index
    %30 = vector.load %arg1[%c9, %c0_6] : memref<16x256xf32, #tpu.memory_space<vmem>>, vector<1x256xf32>
    %c13 = arith.constant 13 : index
    %c0_7 = arith.constant 0 : index
    %31 = vector.load %arg1[%c13, %c0_7] : memref<16x256xf32, #tpu.memory_space<vmem>>, vector<1x256xf32>
    %32 = arith.subf %29, %28 : vector<1x256xf32>
    %33 = arith.subf %31, %30 : vector<1x256xf32>
    %34 = arith.minimumf %29, %31 : vector<1x256xf32>
    %35 = arith.maximumf %28, %30 : vector<1x256xf32>
    %36 = arith.subf %34, %35 : vector<1x256xf32>
    %37 = arith.cmpf oge, %30, %28 : vector<1x256xf32>
    %38 = arith.cmpf ole, %30, %29 : vector<1x256xf32>
    %39 = arith.andi %37, %38 : vector<1x256xi1>
    %40 = arith.extui %39 : vector<1x256xi1> to vector<1x256xi32>
    %41 = arith.sitofp %40 : vector<1x256xi32> to vector<1x256xf32>
    %42 = arith.cmpf oge, %31, %28 : vector<1x256xf32>
    %43 = arith.cmpf ole, %31, %29 : vector<1x256xf32>
    %44 = arith.andi %42, %43 : vector<1x256xi1>
    %45 = arith.extui %44 : vector<1x256xi1> to vector<1x256xi32>
    %46 = arith.sitofp %45 : vector<1x256xi32> to vector<1x256xf32>
    %47 = arith.addf %41, %46 : vector<1x256xf32>
    %48 = arith.cmpf ogt, %29, %30 : vector<1x256xf32>
    %49 = arith.cmpf ogt, %31, %28 : vector<1x256xf32>
    %50 = arith.andi %48, %49 : vector<1x256xi1>
    %51 = arith.subf %28, %30 : vector<1x256xf32>
    %52 = arith.mulf %51, %51 : vector<1x256xf32>
    %53 = arith.subf %29, %31 : vector<1x256xf32>
    %54 = arith.mulf %53, %53 : vector<1x256xf32>
    %55 = arith.addf %52, %54 : vector<1x256xf32>
    %56 = arith.mulf %4, %32 : vector<1x256xf32>
    %57 = arith.mulf %5, %33 : vector<1x256xf32>
    %58 = arith.mulf %8, %36 : vector<1x256xf32>
    %59 = arith.mulf %19, %47 : vector<1x256xf32>
    %60 = arith.andi %22, %50 : vector<1x256xi1>
    %61 = arith.addf %27, %55 : vector<1x256xf32>
    %c2 = arith.constant 2 : index
    %c0_8 = arith.constant 0 : index
    %62 = vector.load %arg1[%c2, %c0_8] : memref<16x256xf32, #tpu.memory_space<vmem>>, vector<1x256xf32>
    %c6 = arith.constant 6 : index
    %c0_9 = arith.constant 0 : index
    %63 = vector.load %arg1[%c6, %c0_9] : memref<16x256xf32, #tpu.memory_space<vmem>>, vector<1x256xf32>
    %c10 = arith.constant 10 : index
    %c0_10 = arith.constant 0 : index
    %64 = vector.load %arg1[%c10, %c0_10] : memref<16x256xf32, #tpu.memory_space<vmem>>, vector<1x256xf32>
    %c14 = arith.constant 14 : index
    %c0_11 = arith.constant 0 : index
    %65 = vector.load %arg1[%c14, %c0_11] : memref<16x256xf32, #tpu.memory_space<vmem>>, vector<1x256xf32>
    %66 = arith.subf %63, %62 : vector<1x256xf32>
    %67 = arith.subf %65, %64 : vector<1x256xf32>
    %68 = arith.minimumf %63, %65 : vector<1x256xf32>
    %69 = arith.maximumf %62, %64 : vector<1x256xf32>
    %70 = arith.subf %68, %69 : vector<1x256xf32>
    %71 = arith.cmpf oge, %64, %62 : vector<1x256xf32>
    %72 = arith.cmpf ole, %64, %63 : vector<1x256xf32>
    %73 = arith.andi %71, %72 : vector<1x256xi1>
    %74 = arith.extui %73 : vector<1x256xi1> to vector<1x256xi32>
    %75 = arith.sitofp %74 : vector<1x256xi32> to vector<1x256xf32>
    %76 = arith.cmpf oge, %65, %62 : vector<1x256xf32>
    %77 = arith.cmpf ole, %65, %63 : vector<1x256xf32>
    %78 = arith.andi %76, %77 : vector<1x256xi1>
    %79 = arith.extui %78 : vector<1x256xi1> to vector<1x256xi32>
    %80 = arith.sitofp %79 : vector<1x256xi32> to vector<1x256xf32>
    %81 = arith.addf %75, %80 : vector<1x256xf32>
    %82 = arith.cmpf ogt, %63, %64 : vector<1x256xf32>
    %83 = arith.cmpf ogt, %65, %62 : vector<1x256xf32>
    %84 = arith.andi %82, %83 : vector<1x256xi1>
    %85 = arith.subf %62, %64 : vector<1x256xf32>
    %86 = arith.mulf %85, %85 : vector<1x256xf32>
    %87 = arith.subf %63, %65 : vector<1x256xf32>
    %88 = arith.mulf %87, %87 : vector<1x256xf32>
    %89 = arith.addf %86, %88 : vector<1x256xf32>
    %90 = arith.mulf %56, %66 : vector<1x256xf32>
    %91 = arith.mulf %57, %67 : vector<1x256xf32>
    %92 = arith.mulf %58, %70 : vector<1x256xf32>
    %93 = arith.mulf %59, %81 : vector<1x256xf32>
    %94 = arith.andi %60, %84 : vector<1x256xi1>
    %95 = arith.addf %61, %89 : vector<1x256xf32>
    %c3 = arith.constant 3 : index
    %c0_12 = arith.constant 0 : index
    %96 = vector.load %arg1[%c3, %c0_12] : memref<16x256xf32, #tpu.memory_space<vmem>>, vector<1x256xf32>
    %c7 = arith.constant 7 : index
    %c0_13 = arith.constant 0 : index
    %97 = vector.load %arg1[%c7, %c0_13] : memref<16x256xf32, #tpu.memory_space<vmem>>, vector<1x256xf32>
    %c11 = arith.constant 11 : index
    %c0_14 = arith.constant 0 : index
    %98 = vector.load %arg1[%c11, %c0_14] : memref<16x256xf32, #tpu.memory_space<vmem>>, vector<1x256xf32>
    %c15 = arith.constant 15 : index
    %c0_15 = arith.constant 0 : index
    %99 = vector.load %arg1[%c15, %c0_15] : memref<16x256xf32, #tpu.memory_space<vmem>>, vector<1x256xf32>
    %100 = arith.subf %97, %96 : vector<1x256xf32>
    %101 = arith.subf %99, %98 : vector<1x256xf32>
    %102 = arith.minimumf %97, %99 : vector<1x256xf32>
    %103 = arith.maximumf %96, %98 : vector<1x256xf32>
    %104 = arith.subf %102, %103 : vector<1x256xf32>
    %105 = arith.cmpf oge, %98, %96 : vector<1x256xf32>
    %106 = arith.cmpf ole, %98, %97 : vector<1x256xf32>
    %107 = arith.andi %105, %106 : vector<1x256xi1>
    %108 = arith.extui %107 : vector<1x256xi1> to vector<1x256xi32>
    %109 = arith.sitofp %108 : vector<1x256xi32> to vector<1x256xf32>
    %110 = arith.cmpf oge, %99, %96 : vector<1x256xf32>
    %111 = arith.cmpf ole, %99, %97 : vector<1x256xf32>
    %112 = arith.andi %110, %111 : vector<1x256xi1>
    %113 = arith.extui %112 : vector<1x256xi1> to vector<1x256xi32>
    %114 = arith.sitofp %113 : vector<1x256xi32> to vector<1x256xf32>
    %115 = arith.addf %109, %114 : vector<1x256xf32>
    %116 = arith.cmpf ogt, %97, %98 : vector<1x256xf32>
    %117 = arith.cmpf ogt, %99, %96 : vector<1x256xf32>
    %118 = arith.andi %116, %117 : vector<1x256xi1>
    %119 = arith.subf %96, %98 : vector<1x256xf32>
    %120 = arith.mulf %119, %119 : vector<1x256xf32>
    %121 = arith.subf %97, %99 : vector<1x256xf32>
    %122 = arith.mulf %121, %121 : vector<1x256xf32>
    %123 = arith.addf %120, %122 : vector<1x256xf32>
    %124 = arith.mulf %90, %100 : vector<1x256xf32>
    %125 = arith.mulf %91, %101 : vector<1x256xf32>
    %126 = arith.mulf %92, %104 : vector<1x256xf32>
    %127 = arith.mulf %93, %115 : vector<1x256xf32>
    %128 = arith.andi %94, %118 : vector<1x256xi1>
    %129 = arith.addf %95, %123 : vector<1x256xf32>
    %cst = arith.constant 5.000000e-01 : f32
    %130 = vector.broadcast %cst : f32 to vector<1x256xf32>
    %131 = arith.mulf %130, %127 : vector<1x256xf32>
    %cst_16 = arith.constant 3.000000e+00 : f32
    %132 = vector.broadcast %cst_16 : f32 to vector<1x256xf32>
    %133 = arith.addf %132, %131 : vector<1x256xf32>
    %cst_17 = arith.constant 1.000000e+00 : f32
    %134 = vector.broadcast %cst_17 : f32 to vector<1x256xf32>
    %135 = arith.select %128, %124, %134 : vector<1x256xi1>, vector<1x256xf32>
    %cst_18 = arith.constant 1.000000e+00 : f32
    %136 = vector.broadcast %cst_18 : f32 to vector<1x256xf32>
    %137 = arith.select %128, %125, %136 : vector<1x256xi1>, vector<1x256xf32>
    %138 = arith.subf %124, %126 : vector<1x256xf32>
    %139 = arith.mulf %133, %138 : vector<1x256xf32>
    %140 = arith.divf %139, %135 : vector<1x256xf32>
    %141 = arith.subf %125, %126 : vector<1x256xf32>
    %142 = arith.divf %141, %137 : vector<1x256xf32>
    %143 = arith.addf %140, %142 : vector<1x256xf32>
    %cst_19 = arith.constant 2.500000e-01 : f32
    %144 = vector.broadcast %cst_19 : f32 to vector<1x256xf32>
    %145 = arith.mulf %129, %144 : vector<1x256xf32>
    %cst_20 = arith.constant 2.000000e+00 : f32
    %146 = vector.broadcast %cst_20 : f32 to vector<1x256xf32>
    %147 = arith.addf %146, %145 : vector<1x256xf32>
    %148 = arith.select %128, %143, %147 : vector<1x256xi1>, vector<1x256xf32>
    %c0_21 = arith.constant 0 : index
    %c0_22 = arith.constant 0 : index
    %149 = vector.load %arg2[%c0_21, %c0_22] : memref<1x256xf32, #tpu.memory_space<vmem>>, vector<1x256xf32>
    tpu.vector_store %arg2[%c0_21, %c0_22], %148 {strides = array<i32>} : memref<1x256xf32, #tpu.memory_space<vmem>>, vector<1x256xf32>,
    return
  }
  func.func @transform_0(%arg0: i32) -> (i32, i32) {
    %c0_i32 = arith.constant 0 : i32
    %c0_i32_0 = arith.constant 0 : i32
    return %c0_i32, %arg0 : i32, i32
  }
  func.func @transform_1(%arg0: i32) -> (i32, i32) {
    %c0_i32 = arith.constant 0 : i32
    %c0_i32_0 = arith.constant 0 : i32
    return %c0_i32, %arg0 : i32, i32
  }
}

</mosaic_0001>

<bundles_post_ra>
// kernel: tpu_custom_call.1
= control target key start
LH: loop header
LB: loop body
LE: loop exit
PB: predicated region body
PF: predicated region fallthrough
CT: control target
= control target key end

     0   :  { %6 = vsyncpa [#allocation3], 0  ;;  %s349_s0 = inlined_call_operand.hbm [shape: f32[16,256], index: 0, kind: input, shape index: {}]   ;;  %s350_s1 = inlined_call_operand.hbm [shape: f32[1,256], index: 1, kind: output, shape index: {}]  }
   0x1   :  { %7 = vsyncpa [#allocation4], 0  ;;  %s268_s6 = smov [#allocation2]   ;;  %s220_s10 = scalar_lea.hbm %s349_s0, 512 }
   0x2   :  { %s13_s7 = sshll.u32 %s268_s6, 4  ;;  %p221_p0 = scmp.ne.s32.totalorder %s349_s0, %s220_s10  ;;  %s14_s7 = int_to_ptr.vmem [resolvable:$true] %s13_s7 }
   0x3   :  { %p224_p1 = scmp.lt.u32.totalorder %s220_s10, %s349_s0 }
   0x5   :  { %p226_p2 = pnand %p224_p1, %p221_p0 }
   0x7   :  { %229 = shalt.err (!%p226_p2)
}
   0x8   :  { %s230_s15 = scalar_lea.vmem %s14_s7, 512  ;;  %p235_p4 = scmp.lt.s32.totalorder %s14_s7, %s14_s7 }
   0x9   :  { %p231_p3 = scmp.ne.s32.totalorder %s14_s7, %s230_s15  ;;  %p236_p5 = scmp.lt.s32.totalorder %s230_s15, %s230_s15 }
   0xb   :  { %p237_p6 = por %p236_p5, %p235_p4 }
   0xd   :  { %p238_p7 = pnand %p237_p6, %p231_p3 }
   0xf   :  { %241 = shalt.err (!%p238_p7)
}
  0x10   :  { %s269_s16 = smov 256   ;;  %s270_s17 = smov 16  }
  0x11   :  { %19 = dma.hbm_to_vmem [thread:$0]  %s349_s0, 512, %s14_s7, [#allocation3], %s269_s16, %s269_s16, %s270_s17  }
  0x12   :  { %264 = dma.done.wait [#allocation3], 512  }
  0x13   :  { %265 = vsyncadd [#allocation3], 4294966784  ;;  %v23_v0 = vld [vmem:[#allocation2] ss:$8 sm:$0x3]  ;;  %v271_v14 = vmov 0.0  }
  0x14   :  { %v25_v1 = vld [vmem:[#allocation2 + $0x4] ss:$8 sm:$0x3]  ;;  %v27_v2 = vld [vmem:[#allocation2 + $0x10] ss:$8 sm:$0x3] }
  0x15   :  { %v29_v3 = vld [vmem:[#allocation2 + $0x14] ss:$8 sm:$0x3]  ;;  %v30_v4 = vsub.f32 %v25_v1, %v23_v0  ;;  %vm35_vm0 = vcmp.ge.f32.partialorder %v27_v2, %v23_v0  ;;  %v55_v7 = vld [vmem:[#allocation2 + $0x1] ss:$8 sm:$0x3]  ;;  %v33_v9 = vmax.f32 %v23_v0, %v27_v2  ;;  %vm36_vm1 = vcmp.le.f32.partialorder %v27_v2, %v25_v1 }
  0x16   :  { %v31_v5 = vsub.f32 %v29_v3, %v27_v2  ;;  %v32_v6 = vmin.f32 %v25_v1, %v29_v3  ;;  %v57_v8 = vld [vmem:[#allocation2 + $0x5] ss:$8 sm:$0x3]  ;;  %vm40_vm2 = vcmp.ge.f32.partialorder %v29_v3, %v23_v0  ;;  %vm41_vm3 = vcmp.le.f32.partialorder %v29_v3, %v25_v1  ;;  %v59_v10 = vld [vmem:[#allocation2 + $0x11] ss:$8 sm:$0x3]  ;;  %vm37_vm4 = vmand %vm35_vm0, %vm36_vm1 }
  0x17   :  { %v61_v11 = vld [vmem:[#allocation2 + $0x15] ss:$8 sm:$0x3]  ;;  %vm46_vm5 = vcmp.gt.f32.partialorder %v25_v1, %v27_v2  ;;  %vm47_vm6 = vcmp.gt.f32.partialorder %v29_v3, %v23_v0  ;;  %v49_v12 = vsub.f32 %v23_v0, %v27_v2  ;;  %v51_v13 = vsub.f32 %v25_v1, %v29_v3  ;;  %vm42_vm7 = vmand %vm40_vm2, %vm41_vm3  ;;  %v93_v25 = vld [vmem:[#allocation2 + $0x2] ss:$8 sm:$0x3] }
  0x18   :  { %v203_v15 = vsel %vm37_vm4, 1.0, %v271_v14  ;;  %v62_v16 = vsub.f32 %v57_v8, %v55_v7  ;;  %v63_v17 = vsub.f32 %v61_v11, %v59_v10  ;;  %v64_v18 = vmin.f32 %v57_v8, %v61_v11  ;;  %vm298_vm8 = vmand %vm46_vm5, %vm47_vm6  ;;  %v95_v28 = vld [vmem:[#allocation2 + $0x6] ss:$8 sm:$0x3]  ;;  %s272_s0 = smov [#allocation5]  }
  0x19   :  { %v204_v19 = vsel %vm42_vm7, 1.0, %v271_v14  ;;  %v50_v20 = vmul.f32 %v49_v12, %v49_v12  ;;  %v52_v21 = vmul.f32 %v51_v13, %v51_v13  ;;  %v65_v22 = vmax.f32 %v55_v7, %v59_v10  ;;  %v97_v29 = vld [vmem:[#allocation2 + $0x12] ss:$8 sm:$0x3]  ;;  %s194_s20 = sshll.u32 %s272_s0, 4  ;;  %s195_s20 = int_to_ptr.vmem [resolvable:$true] %s194_s20 }
  0x1a   :  { %v34_v23 = vsub.f32 %v32_v6, %v33_v9  ;;  %vm67_vm9 = vcmp.ge.f32.partialorder %v59_v10, %v55_v7  ;;  %vm68_vm10 = vcmp.le.f32.partialorder %v59_v10, %v57_v8  ;;  %vm72_vm11 = vcmp.ge.f32.partialorder %v61_v11, %v55_v7  ;;  %v99_v33 = vld [vmem:[#allocation2 + $0x16] ss:$8 sm:$0x3]  ;;  %v131_v48 = vld [vmem:[#allocation2 + $0x3] ss:$8 sm:$0x3]  ;;  %p247_p9 = scmp.lt.s32.totalorder %s195_s20, %s195_s20 }
  0x1b   :  { %v45_v26 = vadd.f32 %v204_v19, %v203_v15  ;;  %v66_v27 = vsub.f32 %v64_v18, %v65_v22  ;;  %vm69_vm12 = vmand %vm67_vm9, %vm68_vm10  ;;  %vm73_vm13 = vcmp.le.f32.partialorder %v61_v11, %v57_v8  ;;  %vm78_vm14 = vcmp.gt.f32.partialorder %v57_v8, %v59_v10  ;;  %v133_v50 = vld [vmem:[#allocation2 + $0x7] ss:$8 sm:$0x3]  ;;  %v135_v51 = vld [vmem:[#allocation2 + $0x13] ss:$8 sm:$0x3] }
  0x1c   :  { %v205_v30 = vsel %vm69_vm12, 1.0, %v271_v14  ;;  %vm74_vm15 = vmand %vm72_vm11, %vm73_vm13  ;;  %vm79_vm0 = vcmp.gt.f32.partialorder %v61_v11, %v55_v7  ;;  %v81_v31 = vsub.f32 %v55_v7, %v59_v10  ;;  %v83_v32 = vsub.f32 %v57_v8, %v61_v11  ;;  %v137_v56 = vld [vmem:[#allocation2 + $0x17] ss:$8 sm:$0x3]  ;;  %s242_s21 = scalar_lea.vmem %s195_s20, 32 }
  0x1d   :  { %v53_v34 = vadd.f32 %v52_v21, %v50_v20  ;;  %v206_v35 = vsel %vm74_vm15, 1.0, %v271_v14  ;;  %vm304_vm1 = vmand %vm78_vm14, %vm79_vm0  ;;  %v86_v37 = vmul.f32 %v62_v16, %v30_v4  ;;  %v87_v38 = vmul.f32 %v63_v17, %v31_v5  ;;  %p243_p8 = scmp.ne.s32.totalorder %s195_s20, %s242_s21  ;;  %p248_p10 = scmp.lt.s32.totalorder %s242_s21, %s242_s21 }
  0x1e   :  { %v77_v39 = vadd.f32 %v206_v35, %v205_v30  ;;  %v82_v40 = vmul.f32 %v81_v31, %v81_v31  ;;  %v84_v41 = vmul.f32 %v83_v32, %v83_v32  ;;  %v100_v42 = vsub.f32 %v95_v28, %v93_v25  ;;  %vm90_vm3 = vmand %vm298_vm8, %vm304_vm1 }
  0x1f   :  { %v101_v43 = vsub.f32 %v99_v33, %v97_v29  ;;  %v102_v44 = vmin.f32 %v95_v28, %v99_v33  ;;  %v103_v45 = vmax.f32 %v93_v25, %v97_v29  ;;  %vm105_vm2 = vcmp.ge.f32.partialorder %v97_v29, %v93_v25  ;;  %p249_p11 = por %p248_p10, %p247_p9 }
  0x20   :  { %v85_v46 = vadd.f32 %v84_v41, %v82_v40  ;;  %v88_v47 = vmul.f32 %v66_v27, %v34_v23  ;;  %vm106_vm4 = vcmp.le.f32.partialorder %v97_v29, %v95_v28  ;;  %vm110_vm5 = vcmp.ge.f32.partialorder %v99_v33, %v93_v25 }
  0x21   :  { %v89_v49 = vmul.f32 %v77_v39, %v45_v26  ;;  %vm107_vm6 = vmand %vm105_vm2, %vm106_vm4  ;;  %vm111_vm7 = vcmp.le.f32.partialorder %v99_v33, %v95_v28  ;;  %vm116_vm9 = vcmp.gt.f32.partialorder %v95_v28, %v97_v29  ;;  %vm117_vm10 = vcmp.gt.f32.partialorder %v99_v33, %v93_v25  ;;  %p250_p12 = pnand %p249_p11, %p243_p8 }
  0x22   :  { %v104_v52 = vsub.f32 %v102_v44, %v103_v45  ;;  %v207_v53 = vsel %vm107_vm6, 1.0, %v271_v14  ;;  %vm112_vm11 = vmand %vm110_vm5, %vm111_vm7  ;;  %v119_v54 = vsub.f32 %v93_v25, %v97_v29  ;;  %v121_v55 = vsub.f32 %v95_v28, %v99_v33 }
  0x23   :  { %v91_v57 = vadd.f32 %v85_v46, %v53_v34  ;;  %v208_v58 = vsel %vm112_vm11, 1.0, %v271_v14  ;;  %vm118_vm12 = vmand %vm116_vm9, %vm117_vm10  ;;  %v124_v59 = vmul.f32 %v100_v42, %v86_v37  ;;  %v125_v60 = vmul.f32 %v101_v43, %v87_v38 }
  0x24   :  { %v115_v61 = vadd.f32 %v208_v58, %v207_v53  ;;  %v120_v62 = vmul.f32 %v119_v54, %v119_v54  ;;  %v122_v63 = vmul.f32 %v121_v55, %v121_v55  ;;  %v138_v0 = vsub.f32 %v133_v50, %v131_v48  ;;  %vm319_vm14 = vmand %vm90_vm3, %vm118_vm12 }
  0x25   :  { %v139_v1 = vsub.f32 %v137_v56, %v135_v51  ;;  %v140_v2 = vmin.f32 %v133_v50, %v137_v56  ;;  %v141_v3 = vmax.f32 %v131_v48, %v135_v51  ;;  %vm143_vm13 = vcmp.ge.f32.partialorder %v135_v51, %v131_v48 }
  0x26   :  { %v123_v4 = vadd.f32 %v122_v63, %v120_v62  ;;  %v126_v5 = vmul.f32 %v104_v52, %v88_v47  ;;  %vm144_vm15 = vcmp.le.f32.partialorder %v135_v51, %v133_v50  ;;  %vm148_vm0 = vcmp.ge.f32.partialorder %v137_v56, %v131_v48 }
  0x27   :  { %v142_v7 = vsub.f32 %v140_v2, %v141_v3  ;;  %vm145_vm2 = vmand %vm143_vm13, %vm144_vm15  ;;  %vm149_vm4 = vcmp.le.f32.partialorder %v137_v56, %v133_v50  ;;  %vm154_vm5 = vcmp.gt.f32.partialorder %v133_v50, %v135_v51  ;;  %vm155_vm6 = vcmp.gt.f32.partialorder %v137_v56, %v131_v48 }
  0x28   :  { %v127_v8 = vmul.f32 %v115_v61, %v89_v49  ;;  %v209_v9 = vsel %vm145_vm2, 1.0, %v271_v14  ;;  %vm150_vm7 = vmand %vm148_vm0, %vm149_vm4  ;;  %v157_v10 = vsub.f32 %v131_v48, %v135_v51  ;;  %v159_v11 = vsub.f32 %v133_v50, %v137_v56 }
  0x29   :  { %v210_v12 = vsel %vm150_vm7, 1.0, %v271_v14  ;;  %vm156_vm8 = vmand %vm154_vm5, %vm155_vm6  ;;  %v162_v13 = vmul.f32 %v138_v0, %v124_v59  ;;  %v163_v15 = vmul.f32 %v139_v1, %v125_v60  ;;  %v164_v20 = vmul.f32 %v142_v7, %v126_v5 }
  0x2a   :  { %v153_v16 = vadd.f32 %v210_v12, %v209_v9  ;;  %v158_v17 = vmul.f32 %v157_v10, %v157_v10  ;;  %v160_v18 = vmul.f32 %v159_v11, %v159_v11  ;;  %vm327_vm1 = vmand %vm319_vm14, %vm156_vm8  ;;  %v129_v14 = vadd.f32 %v123_v4, %v91_v57 }
  0x2b   :  { %v170_v21 = vsel %vm327_vm1, %v162_v13, 1.0  ;;  %v171_v22 = vsel %vm327_vm1, %v163_v15, 1.0  ;;  %v172_v26 = vsub.f32 %v162_v13, %v164_v20  ;;  %v176_v30 = vsub.f32 %v163_v15, %v164_v20 }
  0x2c   :  { %v161_v23 = vadd.f32 %v160_v18, %v158_v17  ;;  %v165_v24 = vmul.f32 %v153_v16, %v127_v8  ;;  %216 = vrcp.f32 %v170_v21  ;;  %v183_v33 = vlaneseq }
  0x2d   :  { %218 = vrcp.f32 %v171_v22 }
  0x2e   :  { %v168_v25 = vmul.f32 0.5, %v165_v24  ;;  %v167_v27 = vadd.f32 %v161_v23, %v129_v14  ;;  %vm185_vm3 = vcmp.lt.s32.totalorder %v183_v33, 256 }
  0x30   :  { %v169_v28 = vadd.f32 3.0, %v168_v25  ;;  %v180_v31 = vmul.f32 0.25, %v167_v27 }
  0x32   :  { %v173_v29 = vmul.f32 %v172_v26, %v169_v28  ;;  %v181_v37 = vadd.f32 2.0, %v180_v31 }
  0x36   :  { %v217_v32 = vpop.eup %216 }
  0x37   :  { %v219_v34 = vpop.eup %218  ;;  %v175_v35 = vmul.f32 %v217_v32, %v173_v29 }
  0x38   :  { %v178_v36 = vmul.f32 %v219_v34, %v176_v30 }
  0x3a   :  { %v179_v38 = vadd.f32 %v178_v36, %v175_v35 }
  0x3c   :  { %v182_v39 = vsel %vm327_vm1, %v179_v38, %v181_v37 }
  0x3d   :  { %187 = vst.msk [vmem:[#allocation5] sm:$0x3] %vm185_vm3, %v182_v39 }
  0x3e   :  { %253 = shalt.err (!%p250_p12)
}
  0x3f   :  { %s254_s24 = scalar_lea.hbm %s350_s1, 32 }
  0x40   :  { %p255_p13 = scmp.ne.s32.totalorder %s350_s1, %s254_s24  ;;  %p258_p0 = scmp.lt.u32.totalorder %s254_s24, %s350_s1 }
  0x42   :  { %p260_p1 = pnand %p258_p0, %p255_p13 }
  0x44   :  { %263 = shalt.err (!%p260_p1)
}
  0x45   :  { %197 = dma.vmem_to_hbm [thread:$0]  %s195_s20, 32, %s350_s1, [#allocation4]  }
  0x46   :  { %266 = dma.done.wait [#allocation4], 32  }
  0x47   :  { %267 = vsyncadd [#allocation4], 4294967264 }
  0x48   :  { %201 = vsyncpa [#allocation3], 1 }
  0x49   :  { %202 = vsyncpa [#allocation4], 1 }

</bundles_post_ra>
